<compile_context>
chip_gen: v7x
topology: tpu7x:2x2x1
jax: 0.10.0
libtpu: 0.0.40
codegen_flags: <defaults>
</compile_context>

<pallas_src>
import jax
import jax.numpy as jnp
from jax.experimental import pallas as pl
from jax.experimental.pallas import tpu as pltpu


def _cdiv(a, b):
    return -(-a // b)


def _round_up(x, m):
    return _cdiv(x, m) * m


def _vmem_limit_bytes():
    """Chip-aware VMEM budget: physical capacity minus 16 MiB headroom.

    v7x (64 MiB)  -> 48 MiB;  v5e/v6e (128 MiB) -> 112 MiB.
    Falls back to the v7x-safe 48 MiB if the hardware query is unavailable.
    """
    phys = 64 << 20
    try:
        phys = int(pltpu.get_tpu_info().vmem_capacity_bytes)
    except Exception:
        pass
    return max(phys - (16 << 20), 32 << 20)


def _choose_node_tile(n_nodes, dim_in, num_graphs, vmem_limit, max_tile_nodes=None,
                      target_tile_bytes=4 << 20):
    """Pick the node-tile row count by bytes (~target_tile_bytes of bf16 features per step).

    Capped so 2x-buffered (TN, D) bf16 features + 2x-buffered (1, TN) int32 ids + the (G, TN)
    bf16 one-hot temporary + the resident (G, D) f32 accumulator fit under `vmem_limit`.
    """
    per_row = 2 * (dim_in * 2 + 4) + num_graphs * 2          # bytes of VMEM per node row
    reserved = 2 * num_graphs * dim_in * 4 + (8 << 20)       # output block (x2) + headroom
    budget = max(vmem_limit - reserved, 1 << 20)
    tn = min(budget // per_row, target_tile_bytes // max(dim_in * 2, 1))
    if max_tile_nodes is not None:
        tn = min(tn, max_tile_nodes)
    tn = min(tn, _round_up(max(n_nodes, 1), 128))            # never bigger than the problem
    tn = max(128, (tn // 128) * 128)                         # multiple of 128 (id-row lane dim)
    if tn >= n_nodes:
        return n_nodes                                       # single exact tile: no mask needed
    return tn


def san_graph_head(x, batch_idx, y, num_graphs, params, *,
                   num_node_splits=2, max_tile_nodes=None):
    """Pallas implementation of SANGraphHead.forward.

    x:         (N, dim_in) node features (bf16 preferred; f32 is cast once here).
    batch_idx: (N,) int graph id per node. Values outside [0, num_graphs) are silently
               ignored (scatter-mean semantics), matching the torch pooling behavior.
    Weights in `params` are [in, out] (transposed vs. torch nn.Linear).
    Returns (pred, y) like the torch module.
    """
    n_nodes, dim_in = x.shape
    dim_out = params["w3"].shape[1]

    # ---- wrapper-side prep: no feature-matrix copy, only tiny O(N) / O(G) ops ------------
    if x.dtype != jnp.bfloat16:
        # TODO(synk): emit bf16 from the producing layer so this cast (a full HBM copy) fuses away.
        x = x.astype(jnp.bfloat16)
    batch_idx = batch_idx.astype(jnp.int32)
    bidx_row = batch_idx.reshape(1, n_nodes)
    # Per-graph inverse node counts (exact f32).  Zero-node graphs get mean 0 (scatter-mean).
    counts = jnp.zeros((num_graphs,), jnp.float32).at[batch_idx].add(1.0)
    inv_cnt = (1.0 / jnp.maximum(counts, 1.0)).reshape(num_graphs, 1)

    # ---- tiling / grid --------------------------------------------------------------------
    vmem_limit = _vmem_limit_bytes()
    tn = _choose_node_tile(n_nodes, dim_in, num_graphs, vmem_limit, max_tile_nodes)
    total_tiles = _cdiv(n_nodes, tn)
    num_splits = max(1, min(num_node_splits, total_tiles))   # "parallel" axis: both TCs on v7x
    tiles_per_split = _cdiv(total_tiles, num_splits)
    covered = num_splits * tiles_per_split * tn
    needs_mask = covered != n_nodes                          # ragged tail / over-provisioned tiles
    last_tile = total_tiles - 1

    def tile_idx(c, i):
        # Clamp so over-provisioned grid steps re-read the last real tile (their contribution is
        # masked to zero in the kernel) instead of issuing an out-of-range block index.
        return jnp.minimum(c * tiles_per_split + i, last_tile)

    def pooling_kernel(bidx_ref, x_ref, out_ref):
        i = pl.program_id(1)

        @pl.when(i == 0)
        def _init():
            out_ref[...] = jnp.zeros_like(out_ref)

        xt = x_ref[...]                                       # (tn, dim_in) bf16
        if needs_mask:
            # Zero rows whose intended node position is past N (stale / unspecified data).
            tile = pl.program_id(0) * tiles_per_split + i     # intended (unclamped) tile index
            pos = tile * tn + jax.lax.broadcasted_iota(jnp.int32, (tn, 1), 0)
            xt = jnp.where(pos < n_nodes, xt, jnp.zeros_like(xt))
        # bf16 one-hot membership: (G,1) iota vs (1,tn) id row.  Stale / out-of-range ids only
        # ever multiply zeroed rows, so they contribute nothing.
        gids = jax.lax.broadcasted_iota(jnp.int32, (num_graphs, 1), 0)
        onehot = (gids == bidx_ref[...]).astype(jnp.bfloat16)  # (G, tn)
        # Single MXU matmul per tile, accumulated straight into the resident f32 output block.
        out_ref[...] += jnp.dot(onehot, xt, preferred_element_type=jnp.float32)

    partial_sums = pl.pallas_call(
        pooling_kernel,
        out_shape=jax.ShapeDtypeStruct((num_splits, num_graphs, dim_in), jnp.float32),
        grid_spec=pltpu.PrefetchScalarGridSpec(
            num_scalar_prefetch=0,
            grid=(num_splits, tiles_per_split),
            in_specs=[
                pl.BlockSpec((1, tn), lambda c, i: (0, tile_idx(c, i))),        # graph ids
                pl.BlockSpec((tn, dim_in), lambda c, i: (tile_idx(c, i), 0)),   # node features
            ],
            out_specs=pl.BlockSpec((None, num_graphs, dim_in), lambda c, i: (c, 0, 0)),
        ),
        compiler_params=pltpu.CompilerParams(
            dimension_semantics=("parallel", "arbitrary"),   # split across TCs x node reduction
            vmem_limit_bytes=vmem_limit,
        ),
    )(bidx_row, x)

    # ---- epilogue: gridless micro-kernel (reduce partials, mean, 3-layer MLP) -------------
    # Weights live only here (outside the node loop): fetched once, bf16-resident, f32 accum.
    def head_kernel(part_ref, invc_ref, w1, b1, w2, b2, w3, b3, out_ref):
        emb = jnp.sum(part_ref[...], axis=0) * invc_ref[...]                 # (G, dim_in) mean
        h = jnp.dot(emb.astype(jnp.bfloat16), w1[...],
                    preferred_element_type=jnp.float32) + b1[...]
        h = jnp.maximum(h, 0.0)
        h = jnp.dot(h.astype(jnp.bfloat16), w2[...],
                    preferred_element_type=jnp.float32) + b2[...]
        h = jnp.maximum(h, 0.0)
        out_ref[...] = jnp.dot(h.astype(jnp.bfloat16), w3[...],
                               preferred_element_type=jnp.float32) + b3[...]

    pred = pl.pallas_call(
        head_kernel,
        out_shape=jax.ShapeDtypeStruct((num_graphs, dim_out), jnp.float32),
    )(partial_sums, inv_cnt,
      params["w1"].astype(jnp.bfloat16), params["b1"].astype(jnp.float32),
      params["w2"].astype(jnp.bfloat16), params["b2"].astype(jnp.float32),
      params["w3"].astype(jnp.bfloat16), params["b3"].astype(jnp.float32))

    # TODO(synk): for production batches with many graphs and PyG-sorted batch_idx, switch the
    # pooling kernel to num_scalar_prefetch with per-tile [g_start, g_count] scalars so each tile
    # builds only a (G_local, TN) one-hot and accumulates into out[pl.ds(g_start, G_local), :].
    return pred, y


def init_params(key, dim_in, dim_out, L=2):
    """Deterministic synthetic init matching SANGraphHead layer shapes (weights as [in, out])."""
    dims = [dim_in // (2 ** l) for l in range(L + 1)] + [dim_out]
    params = {}
    for i in range(L + 1):
        key, kw, kb = jax.random.split(key, 3)
        fan_in, fan_out = dims[i], dims[i + 1]
        params[f"w{i + 1}"] = (jax.random.normal(kw, (fan_in, fan_out), jnp.float32)
                               * (1.0 / jnp.sqrt(fan_in)))
        params[f"b{i + 1}"] = jax.random.normal(kb, (1, fan_out), jnp.float32) * 0.01
    return params


def reference(x, batch_idx, num_graphs, params):
    """Pure-JAX reference mirroring the kernel's bf16 feature/weight path (module math otherwise)."""
    xf = x.astype(jnp.float32)
    onehot = (batch_idx[None, :] == jnp.arange(num_graphs)[:, None]).astype(jnp.float32)
    cnt = onehot.sum(-1, keepdims=True)
    emb = (onehot @ xf) / jnp.maximum(cnt, 1.0)

    def lin(h, w, b):
        hq = h.astype(jnp.bfloat16).astype(jnp.float32)
        wq = w.astype(jnp.bfloat16).astype(jnp.float32)
        return hq @ wq + b

    h = jnp.maximum(lin(emb, params["w1"], params["b1"]), 0.0)
    h = jnp.maximum(lin(h, params["w2"], params["b2"]), 0.0)
    return lin(h, params["w3"], params["b3"])


if __name__ == "__main__":
    key = jax.random.PRNGKey(0)
    DIM_IN, DIM_OUT, L = 32, 1, 2
    params = init_params(jax.random.PRNGKey(0), DIM_IN, DIM_OUT, L)

    # Test 1: small module-consistent shapes (single exact tile, no masking).
    N1, G1 = 24, 4
    key, kx1, ky1 = jax.random.split(key, 3)
    x1 = jax.random.normal(kx1, (N1, DIM_IN), jnp.float32).astype(jnp.bfloat16)  # producer emits bf16
    bidx1 = jnp.repeat(jnp.arange(G1, dtype=jnp.int32), N1 // G1)
    y1 = jax.random.normal(ky1, (G1, DIM_OUT), jnp.float32)
    pred1, label1 = san_graph_head(x1, bidx1, y1, G1, params)
    pred1 = jax.block_until_ready(pred1)
    ref1 = reference(x1, bidx1, G1, params)
    assert pred1.shape == (G1, DIM_OUT) and label1.shape == (G1, DIM_OUT)
    assert jnp.allclose(pred1, ref1, atol=1e-2, rtol=1e-2)

    # Test 2: multi-tile, ragged node count, unsorted ids, over-provisioned parallel split
    # (exercises pl.when init, index_map clamping, and in-kernel row masking).
    N2, G2 = 300, 7
    key, kx2, kb2, ky2 = jax.random.split(key, 4)
    x2 = jax.random.normal(kx2, (N2, DIM_IN), jnp.float32).astype(jnp.bfloat16)
    bidx2 = jax.random.randint(kb2, (N2,), 0, G2, dtype=jnp.int32)
    y2 = jax.random.normal(ky2, (G2, DIM_OUT), jnp.float32)
    pred2, _ = san_graph_head(x2, bidx2, y2, G2, params, max_tile_nodes=128)
    pred2 = jax.block_until_ready(pred2)
    ref2 = reference(x2, bidx2, G2, params)
    assert pred2.shape == (G2, DIM_OUT)
    assert jnp.allclose(pred2, ref2, atol=1e-2, rtol=1e-2)

    # Test 3: exact-fit node count split across both "parallel" node ranges (no-mask path).
    N3, G3 = 256, 5
    key, kx3, kb3, ky3 = jax.random.split(key, 4)
    x3 = jax.random.normal(kx3, (N3, DIM_IN), jnp.float32).astype(jnp.bfloat16)
    bidx3 = jnp.sort(jax.random.randint(kb3, (N3,), 0, G3, dtype=jnp.int32))
    y3 = jax.random.normal(ky3, (G3, DIM_OUT), jnp.float32)
    pred3, _ = san_graph_head(x3, bidx3, y3, G3, params, max_tile_nodes=128)
    pred3 = jax.block_until_ready(pred3)
    ref3 = reference(x3, bidx3, G3, params)
    assert pred3.shape == (G3, DIM_OUT)
    assert jnp.allclose(pred3, ref3, atol=1e-2, rtol=1e-2)

    print("KERNEL_OK")
</pallas_src>

<mosaic_0001>
module attributes {stable_mosaic.version = 11 : i64} {
  func.func @pooling_kernel(%arg0: i32, %arg1: i32, %arg2: memref<1x24xi32, #tpu.memory_space<vmem>>, %arg3: memref<24x32xbf16, #tpu.memory_space<vmem>>, %arg4: memref<1x4x32xf32, #tpu.memory_space<vmem>>) attributes {dimension_semantics = [#tpu.dimension_semantics<parallel>, #tpu.dimension_semantics<arbitrary>], iteration_bounds = array<i64: 1, 1>, scalar_prefetch = 0 : i64, scratch_operands = 0 : i64, tpu.core_type = #tpu.core_type<tc>, window_params = [{transform_indices = @transform_0, window_bounds = array<i64: 1, 24>}, {transform_indices = @transform_1, window_bounds = array<i64: 24, 32>}, {transform_indices = @transform_2, window_bounds = array<i64: 1, 4, 32>}]} {
    %c0_i32 = arith.constant 0 : i32
    %0 = arith.cmpi eq, %arg1, %c0_i32 : i32
    %1 = arith.extui %0 : i1 to i32
    %c0_i32_0 = arith.constant 0 : i32
    %2 = arith.cmpi ne, %1, %c0_i32_0 : i32
    scf.if %2 {
      %cst_10 = arith.constant 0.000000e+00 : f32
      %19 = vector.broadcast %cst_10 : f32 to vector<4x32xf32>
      %c0_11 = arith.constant 0 : index
      %c0_12 = arith.constant 0 : index
      %c0_13 = arith.constant 0 : index
      %20 = vector.load %arg4[%c0_11, %c0_12, %c0_13] : memref<1x4x32xf32, #tpu.memory_space<vmem>>, vector<1x4x32xf32>
      %21 = vector.shape_cast %20 : vector<1x4x32xf32> to vector<4x32xf32>
      %22 = vector.shape_cast %19 : vector<4x32xf32> to vector<1x4x32xf32>
      tpu.vector_store %arg4[%c0_11, %c0_12, %c0_13], %22 {strides = array<i32>} : memref<1x4x32xf32, #tpu.memory_space<vmem>>, vector<1x4x32xf32>,
    } else {
    }
    %c0 = arith.constant 0 : index
    %c0_1 = arith.constant 0 : index
    %3 = vector.load %arg3[%c0, %c0_1] : memref<24x32xbf16, #tpu.memory_space<vmem>>, vector<24x32xbf16>
    %4 = tpu.iota {dimensions = array<i32: 0>} : vector<4x1xi32>
    %c0_2 = arith.constant 0 : index
    %c0_3 = arith.constant 0 : index
    %5 = vector.load %arg2[%c0_2, %c0_3] : memref<1x24xi32, #tpu.memory_space<vmem>>, vector<1x24xi32>
    %6 = vector.broadcast %4 : vector<4x1xi32> to vector<4x24xi32>
    %7 = vector.broadcast %5 : vector<1x24xi32> to vector<4x24xi32>
    %8 = arith.cmpi eq, %6, %7 : vector<4x24xi32>
    %9 = arith.extui %8 : vector<4x24xi1> to vector<4x24xi32>
    %10 = arith.sitofp %9 : vector<4x24xi32> to vector<4x24xf32>
    %11 = arith.truncf %10 : vector<4x24xf32> to vector<4x24xbf16>
    %c0_4 = arith.constant 0 : index
    %c0_5 = arith.constant 0 : index
    %c0_6 = arith.constant 0 : index
    %12 = vector.load %arg4[%c0_4, %c0_5, %c0_6] : memref<1x4x32xf32, #tpu.memory_space<vmem>>, vector<1x4x32xf32>
    %13 = vector.shape_cast %12 : vector<1x4x32xf32> to vector<4x32xf32>
    %cst = arith.constant dense<0.000000e+00> : vector<4x32xf32>
    %14 = tpu.matmul %11, %3, %cst {dimension_numbers = #tpu.dot_dimension_numbers<[1], [0], [0], [1], [0, 0, 1, 1], [], []>} : vector<4x24xbf16>, vector<24x32xbf16>, vector<4x32xf32> -> vector<4x32xf32>
    %15 = arith.addf %13, %14 : vector<4x32xf32>
    %c0_7 = arith.constant 0 : index
    %c0_8 = arith.constant 0 : index
    %c0_9 = arith.constant 0 : index
    %16 = vector.load %arg4[%c0_7, %c0_8, %c0_9] : memref<1x4x32xf32, #tpu.memory_space<vmem>>, vector<1x4x32xf32>
    %17 = vector.shape_cast %16 : vector<1x4x32xf32> to vector<4x32xf32>
    %18 = vector.shape_cast %15 : vector<4x32xf32> to vector<1x4x32xf32>
    tpu.vector_store %arg4[%c0_7, %c0_8, %c0_9], %18 {strides = array<i32>} : memref<1x4x32xf32, #tpu.memory_space<vmem>>, vector<1x4x32xf32>,
    return
  }
  func.func @transform_0(%arg0: i32, %arg1: i32) -> (i32, i32) {
    %c1_i32 = arith.constant 1 : i32
    %0 = arith.muli %arg0, %c1_i32 : i32
    %1 = arith.addi %0, %arg1 : i32
    %c0_i32 = arith.constant 0 : i32
    %2 = arith.minsi %1, %c0_i32 : i32
    %c0_i32_0 = arith.constant 0 : i32
    %c0_i32_1 = arith.constant 0 : i32
    return %c0_i32_0, %2 : i32, i32
  }
  func.func @transform_1(%arg0: i32, %arg1: i32) -> (i32, i32) {
    %c1_i32 = arith.constant 1 : i32
    %0 = arith.muli %arg0, %c1_i32 : i32
    %1 = arith.addi %0, %arg1 : i32
    %c0_i32 = arith.constant 0 : i32
    %2 = arith.minsi %1, %c0_i32 : i32
    %c0_i32_0 = arith.constant 0 : i32
    %c0_i32_1 = arith.constant 0 : i32
    return %2, %c0_i32_0 : i32, i32
  }
  func.func @transform_2(%arg0: i32, %arg1: i32) -> (i32, i32, i32) {
    %c0_i32 = arith.constant 0 : i32
    %c0_i32_0 = arith.constant 0 : i32
    %c0_i32_1 = arith.constant 0 : i32
    return %arg0, %c0_i32, %c0_i32_0 : i32, i32, i32
  }
}

</mosaic_0001>

<bundles_post_ra>
// kernel: tpu_custom_call.1
= control target key start
LH: loop header
LB: loop body
LE: loop exit
PB: predicated region body
PF: predicated region fallthrough
CT: control target
= control target key end

     0   :  { %7 = vsyncpa [#allocation3], 0  ;;  %s322_s0 = inlined_call_operand.hbm [shape: s32[1,24], index: 0, kind: input, shape index: {}]   ;;  %s323_s1 = inlined_call_operand.hbm [shape: bf16[24,32], index: 1, kind: input, shape index: {}]   ;;  %s324_s2 = inlined_call_operand.hbm [shape: f32[1,4,32], index: 2, kind: output, shape index: {}]  }
   0x1   :  { %8 = vsyncpa [#allocation6], 0 }
   0x2   :  { %9 = vsyncpa [#allocation4], 0  ;;  %s255_s9 = smov [#allocation2]   ;;  %s256_s11 = smov [#allocation5]  }
   0x3   :  { %s21_s10 = sshll.u32 %s255_s9, 4  ;;  %s36_s12 = sshll.u32 %s256_s11, 4  ;;  %s22_s10 = int_to_ptr.vmem [resolvable:$true] %s21_s10  ;;  %s277_s12 = int_to_ptr.vmem [resolvable:$true] %s36_s12 }
   0x4   :  { %s183_s15 = scalar_lea.hbm %s322_s0, 16 }
   0x5   :  { %p184_p0 = scmp.ne.s32.totalorder %s322_s0, %s183_s15  ;;  %p187_p1 = scmp.lt.u32.totalorder %s183_s15, %s322_s0 }
   0x7   :  { %p189_p2 = pnand %p187_p1, %p184_p0 }
   0x9   :  { %192 = shalt.err (!%p189_p2)
}
   0xa   :  { %s193_s20 = scalar_lea.vmem %s22_s10, 16  ;;  %s197_s21 = scalar_lea.vmem %s22_s10, 32 }
   0xb   :  { %p194_p3 = scmp.ne.s32.totalorder %s22_s10, %s193_s20  ;;  %p198_p4 = scmp.lt.s32.totalorder %s22_s10, %s22_s10 }
   0xc   :  { %p199_p5 = scmp.lt.s32.totalorder %s197_s21, %s193_s20 }
   0xe   :  { %p200_p6 = por %p199_p5, %p198_p4 }
  0x10   :  { %p201_p7 = pnand %p200_p6, %p194_p3 }
  0x12   :  { %204 = shalt.err (!%p201_p7)
}
  0x13   :  { %24 = dma.hbm_to_vmem [thread:$0]  %s322_s0, 16, %s22_s10, [#allocation3]  }
  0x14   :  { %s205_s26 = scalar_lea.hbm %s323_s1, 192 }
  0x15   :  { %p206_p8 = scmp.ne.s32.totalorder %s323_s1, %s205_s26  ;;  %p209_p9 = scmp.lt.u32.totalorder %s205_s26, %s323_s1 }
  0x17   :  { %p211_p10 = pnand %p209_p9, %p206_p8 }
  0x19   :  { %214 = shalt.err (!%p211_p10)
}
  0x1a   :  { %s215_s3 = scalar_lea.vmem %s277_s12, 192  ;;  %p220_p12 = scmp.lt.s32.totalorder %s277_s12, %s277_s12 }
  0x1b   :  { %p216_p11 = scmp.ne.s32.totalorder %s277_s12, %s215_s3  ;;  %p221_p13 = scmp.lt.s32.totalorder %s215_s3, %s215_s3 }
  0x1d   :  { %p222_p0 = por %p221_p13, %p220_p12 }
  0x1f   :  { %p223_p1 = pnand %p222_p0, %p216_p11 }
  0x21   :  { %226 = shalt.err (!%p223_p1)
}
  0x22   :  { %s257_s0 = smov 64   ;;  %s258_s4 = smov 4  }
  0x23   :  { %42 = dma.hbm_to_vmem [thread:$0]  %s323_s1, 192, %s277_s12, [#allocation6], %s257_s0, %s257_s0, %s258_s4  }
  0x24   :  { %249 = dma.done.wait [#allocation3], 16  }
  0x25   :  { %250 = vsyncadd [#allocation3], 4294967280 }
  0x26   :  { %251 = dma.done.wait [#allocation6], 192  }
  0x27   :  { %252 = vsyncadd [#allocation6], 4294967104  ;;  %vm61_vm0 = vcmask 257024   ;;  %v259_v0 = vmov 0.0   ;;  %vm260_vm1 = vmmov 0   ;;  %v66_v1 = vlaneseq  ;;  %v181_v3 = vld [vmem:[#allocation5] sm:$0xff]  }
  0x28   :  { %62 = vst.msk [vmem:[#allocation7] sm:$0xf] %vm61_vm0, %v259_v0  ;;  %166 = vmatprep.subr.bf16.mxu0 %v259_v0  ;;  %170 = vmatprep.mubr.msk.bf16.mxu0 %vm260_vm1, %v259_v0  ;;  %vm91_vm2 = vcmask 1043456   ;;  %v182_v4 = vld [vmem:[#allocation5 + $0x8] ss:$0 sps:$4 sm:$0xff]   ;;  %vm87_vm4 = vcmask 195584  }
  0x29   :  { %v67_v2 = vshrl.u32 %v66_v1, 7  ;;  %v158_v5 = vld [vmem:[#allocation2] ss:$0 sm:$0xff]  ;;  %167 = vmatpush3.bf16.msra.mxu0 %v181_v3  ;;  %v93_v6 = vsel %vm91_vm2, %v182_v4, 0  ;;  %s261_s1 = smov [#allocation7]  }
  0x2a   :  { %168 = vmatprep.subr.bf16.mxu0 %v259_v0  ;;  %s144_s7 = sshll.u32 %s261_s1, 4  ;;  %s145_s7 = int_to_ptr.vmem [resolvable:$true] %s144_s7 }
  0x2b   :  { %vm73_vm3 = vcmp.eq.s32.totalorder %v67_v2, %v158_v5  ;;  %s227_s8 = scalar_lea.vmem %s145_s7, 64  ;;  %p232_p3 = scmp.lt.s32.totalorder %s145_s7, %s145_s7 }
  0x2c   :  { %v159_v7 = vsel %vm73_vm3, 1.0, %v259_v0  ;;  %p228_p2 = scmp.ne.s32.totalorder %s145_s7, %s227_s8  ;;  %p233_p4 = scmp.lt.s32.totalorder %s227_s8, %s227_s8 }
  0x2d   :  { %v76_v8 = vpack.c.bf16 %v159_v7, %v159_v7  ;;  %169 = vmatpush3.bf16.msra.mxu0 %v93_v6 }
  0x2e   :  { %p234_p5 = por %p233_p4, %p232_p3 }
  0x2f   :  { %v77_v9 = vld [vmem:[#allocation7] sm:$0xf] }
  0x30   :  { %171 = vmatmul.mubr.msk.bf16.vlgmr.msra.gmra.mrb[0].mxu0 %vm87_vm4, %v76_v8  ;;  %p235_p6 = pnand %p234_p5, %p228_p2 }
 0x103   :  { %v129_v10 = vpop.f32.mrb[0].mxu0 }
 0x104   :  { %v135_v11 = vadd.f32 %v129_v10, %v77_v9  ;;  %v172_v12 = vpop.f32.mrb[1].mxu0 }
 0x105   :  { %v132_v13 = vpop.f32.mrb[2].mxu0 }
 0x106   :  { %137 = vst.msk [vmem:[#allocation7] sm:$0xf] %vm61_vm0, %v135_v11  ;;  %v173_v14 = vpop.f32.mrb[3].mxu0 }
 0x107   :  { %238 = shalt.err (!%p235_p6)
}
 0x108   :  { %s239_s11 = scalar_lea.hbm %s324_s2, 64 }
 0x109   :  { %p240_p7 = scmp.ne.s32.totalorder %s324_s2, %s239_s11  ;;  %p243_p8 = scmp.lt.u32.totalorder %s239_s11, %s324_s2 }
 0x10b   :  { %p245_p9 = pnand %p243_p8, %p240_p7 }
 0x10d   :  { %248 = shalt.err (!%p245_p9)
}
 0x10e   :  { %147 = dma.vmem_to_hbm [thread:$0]  %s145_s7, 64, %s324_s2, [#allocation4]  }
 0x10f   :  { %253 = dma.done.wait [#allocation4], 64  }
 0x110   :  { %254 = vsyncadd [#allocation4], 4294967232 }
 0x111   :  { %151 = vsyncpa [#allocation3], 1 }
 0x112   :  { %152 = vsyncpa [#allocation6], 1 }
 0x113   :  { %153 = vsyncpa [#allocation4], 1 }

</bundles_post_ra>
